<compile_context>
chip_gen: v7x
topology: tpu7x:2x2x1
jax: 0.10.0
libtpu: 0.0.40
codegen_flags: <defaults>
</compile_context>

<pallas_src>
import functools
import math

import jax
import jax.numpy as jnp
from jax.experimental import pallas as pl
from jax.experimental.pallas import tpu as pltpu


NPAD = 128  # lane-tile width; every fused weight segment is padded to this


def _round_up(n, m):
    return ((n + m - 1) // m) * m


def _softplus(x):
    # numerically stable softplus using only VPU/EUP-friendly ops
    return jnp.maximum(x, 0.0) + jnp.log1p(jnp.exp(-jnp.abs(x)))


def gmvae_kernel(x_ref, g_ref, eps_ref,
                 wx_ref, bx_ref,       # x-LHS fused:        [wy | w1x], [by | b1]
                 wy_ref, by_ref,       # y_onehot-LHS fused:  [w1y | wp_mu | wp_s | woy], [0 | bp_mu | bp_s | bo]
                 wh_ref, bh_ref,       # h-LHS fused:         [w2_mu | w2_s], [b2_mu | b2_s]
                 woz_ref,              # z-LHS:               [woz] padded
                 out_ref,
                 *, tau, d_out, num_cat, mxu_dtype):
    f32 = jnp.float32
    x = x_ref[...]
    g = g_ref[...]
    eps = eps_ref[...]

    tb = x.shape[0]
    lane = jax.lax.broadcasted_iota(jnp.int32, (tb, NPAD), 1)
    cat_mask = lane < num_cat
    feat_mask = lane < d_out
    neg = jnp.float32(-1e30)

    # ---- fused x matmul: [ y_logits | h_x (+b1) ]  -- splits at 128 boundary ----
    xw = jnp.dot(x.astype(mxu_dtype), wx_ref[...],
                 preferred_element_type=f32) + bx_ref[...]
    y_logits = jnp.where(cat_mask, xw[:, :NPAD], neg)   # pads -> -1e30
    h_x = xw[:, NPAD:]                                  # pads -> 0

    # ---- soft gumbel-softmax (F.gumbel_softmax default hard=False) ----
    gs = (y_logits + g) * (1.0 / tau)
    gs = gs - jnp.max(gs, axis=-1, keepdims=True)
    gs_e = jnp.where(cat_mask, jnp.exp(gs), 0.0)
    y_onehot = gs_e * pl.reciprocal(
        jnp.sum(gs_e, axis=-1, keepdims=True), approx=True)   # pads stay 0

    # ---- fused y_onehot matmul: [ h_y | mu_p | sp_raw | out_y (+bo) ] ----
    yw = jnp.dot(y_onehot.astype(mxu_dtype), wy_ref[...],
                 preferred_element_type=f32) + by_ref[...]
    h_y = yw[:, 0 * NPAD:1 * NPAD]
    mu_p = yw[:, 1 * NPAD:2 * NPAD]
    sp_raw = yw[:, 2 * NPAD:3 * NPAD]
    out_y = yw[:, 3 * NPAD:4 * NPAD]

    # z_net hidden layer
    h = jnp.maximum(h_x + h_y, 0.0)   # pads -> 0

    # ---- fused h matmul: [ mu_q | sq_raw ] ----
    hw = jnp.dot(h.astype(mxu_dtype), wh_ref[...],
                 preferred_element_type=f32) + bh_ref[...]
    mu_q = hw[:, :NPAD]
    sq_raw = hw[:, NPAD:]

    # small clamp keeps log()/1/sp**2 finite when softplus underflows
    sq = jnp.maximum(_softplus(sq_raw), 1e-12)
    sp = jnp.maximum(_softplus(sp_raw), 1e-12)
    z = mu_q + sq * eps   # rsample of q(z|x,y)

    # ---- out = out_net([z, y_onehot]) ----
    out = jnp.dot(z.astype(mxu_dtype), woz_ref[...],
                  preferred_element_type=f32) + out_y

    # ---- kl_y = KL(Categorical(logits=y) || uniform(1/num_cat)) ----
    ymax = jnp.max(y_logits, axis=-1, keepdims=True)
    ye = jnp.where(cat_mask, jnp.exp(y_logits - ymax), 0.0)
    ysum = jnp.sum(ye, axis=-1, keepdims=True)
    p = ye * pl.reciprocal(ysum, approx=True)            # softmax(y), pads 0
    logp = (y_logits - ymax) - jnp.log(ysum)
    kl_y = jnp.sum(jnp.where(cat_mask, p * logp, 0.0), axis=-1, keepdims=True) \
        + math.log(num_cat)

    # ---- kl_z = KL(N(mu_q, sq) || N(mu_p, sp)).sum(-1) ----
    inv_2sp2 = 0.5 * pl.reciprocal(sp * sp, approx=True)
    kl_terms = (jnp.log(sp) - jnp.log(sq)
                + (sq * sq + (mu_q - mu_p) ** 2) * inv_2sp2
                - 0.5)
    kl_z = jnp.sum(jnp.where(feat_mask, kl_terms, 0.0), axis=-1, keepdims=True)

    total_kl = kl_y + kl_z

    # ---- pack stats into one lane-dense tile: p at [0:num_cat], KLs after ----
    stats = (p
             + jnp.where(lane == num_cat, total_kl, 0.0)
             + jnp.where(lane == num_cat + 1, kl_y, 0.0)
             + jnp.where(lane == num_cat + 2, kl_z, 0.0))

    # single (tb, 256) output: two tile-aligned, unmasked stores
    out_ref[:, :NPAD] = out.astype(out_ref.dtype)
    out_ref[:, NPAD:] = stats.astype(out_ref.dtype)


def init_params(key, input_dim, output_dim, num_cat, dtype=jnp.float32):
    """PyTorch-Linear-style init (uniform(-1/sqrt(fan_in), +)); raw layout."""
    ks = jax.random.split(key, 10)

    def lin(kw, kb, fan_in, fan_out):
        bound = 1.0 / math.sqrt(fan_in)
        w = jax.random.uniform(kw, (fan_in, fan_out), dtype, -bound, bound)
        b = jax.random.uniform(kb, (fan_out,), dtype, -bound, bound)
        return w, b

    wy, by = lin(ks[0], ks[1], input_dim, num_cat)                       # y_net
    w1, b1 = lin(ks[2], ks[3], input_dim + num_cat, output_dim)          # z_net L1
    w2, b2 = lin(ks[4], ks[5], output_dim, 2 * output_dim)               # z_net L2
    wp, bp = lin(ks[6], ks[7], num_cat, 2 * output_dim)                  # z_prior_net
    wo, bo = lin(ks[8], ks[9], output_dim + num_cat, output_dim)         # out_net
    return dict(wy=wy, by=by, w1=w1, b1=b1, w2=w2, b2=b2, wp=wp, bp=bp, wo=wo, bo=bo)


def pack_params(raw, mxu_dtype=jnp.float32):
    """Split, pad to 128-lane segments and fuse same-LHS weights (wrapper-side, free)."""
    wy, by = raw["wy"], raw["by"]
    w1, b1 = raw["w1"], raw["b1"]
    w2, b2 = raw["w2"], raw["b2"]
    wp, bp = raw["wp"], raw["bp"]
    wo, bo = raw["wo"], raw["bo"]

    input_dim, num_cat = wy.shape
    d_out = wo.shape[1]
    assert num_cat + 3 <= NPAD and d_out <= NPAD, "num_cat/output_dim must fit one lane tile"

    def padc(w):   # pad output (lane) dim to NPAD
        return jnp.pad(w, ((0, 0), (0, NPAD - w.shape[1])))

    def padrc(w):  # pad both dims to NPAD
        return jnp.pad(w, ((0, NPAD - w.shape[0]), (0, NPAD - w.shape[1])))

    def padv(b):
        return jnp.pad(b, (0, NPAD - b.shape[0]))

    # split composite layers along their natural axes (wrapper-side)
    w1x, w1y = w1[:input_dim], w1[input_dim:]
    w2_mu, w2_s = w2[:, :d_out], w2[:, d_out:]
    b2_mu, b2_s = b2[:d_out], b2[d_out:]
    wp_mu, wp_s = wp[:, :d_out], wp[:, d_out:]
    bp_mu, bp_s = bp[:d_out], bp[d_out:]
    woz, woy = wo[:d_out], wo[d_out:]

    # x-LHS fused:        [ y_logits | h_x(+b1) ]
    wx_f = jnp.concatenate([padc(wy), padc(w1x)], axis=1)                 # (in, 256)
    bx_f = jnp.concatenate([padv(by), padv(b1)])[None, :]                 # (1, 256)

    # y_onehot-LHS fused: [ h_y | mu_p | sp_raw | out_y(+bo) ]
    wy_f = jnp.concatenate([padrc(w1y), padrc(wp_mu), padrc(wp_s), padrc(woy)], axis=1)  # (128, 512)
    by_f = jnp.concatenate([jnp.zeros((NPAD,), jnp.float32),
                            padv(bp_mu), padv(bp_s), padv(bo)])[None, :]  # (1, 512)

    # h-LHS fused:        [ mu_q | sq_raw ]
    wh_f = jnp.concatenate([padrc(w2_mu), padrc(w2_s)], axis=1)           # (128, 256)
    bh_f = jnp.concatenate([padv(b2_mu), padv(b2_s)])[None, :]            # (1, 256)

    woz_p = padrc(woz)                                                    # (128, 128)

    return dict(
        wx=wx_f.astype(mxu_dtype), bx=bx_f.astype(jnp.float32),
        wy=wy_f.astype(mxu_dtype), by=by_f.astype(jnp.float32),
        wh=wh_f.astype(mxu_dtype), bh=bh_f.astype(jnp.float32),
        woz=woz_p.astype(mxu_dtype),
        input_dim=input_dim, d_out=d_out, num_cat=num_cat, mxu_dtype=mxu_dtype,
    )


def gmvae_forward(x, packed, key, tau=1.0, tb_max=512):
    B, input_dim = x.shape
    assert input_dim == packed["input_dim"]
    num_cat = packed["num_cat"]
    d_out = packed["d_out"]
    mxu_dtype = packed["mxu_dtype"]

    # batch tiling: <=512-row blocks, padded to a multiple of the tile
    TB = min(tb_max, _round_up(B, 8))
    Bp = _round_up(B, TB)
    grid = (Bp // TB,)

    xk = x.astype(mxu_dtype)
    if Bp != B:
        xk = jnp.pad(xk, ((0, Bp - B), (0, 0)))

    kg, ke = jax.random.split(key)
    g = jax.random.gumbel(kg, (Bp, NPAD), dtype=jnp.float32)    # gumbel noise
    eps = jax.random.normal(ke, (Bp, NPAD), dtype=jnp.float32)  # rsample eps for z

    def batch_spec(shape):
        return pl.BlockSpec(shape, lambda i: (i, 0))

    def fixed_spec(shape):
        return pl.BlockSpec(shape, lambda i: (0, 0))

    in_specs = [
        batch_spec((TB, input_dim)),
        batch_spec((TB, NPAD)),
        batch_spec((TB, NPAD)),
        fixed_spec(packed["wx"].shape), fixed_spec(packed["bx"].shape),
        fixed_spec(packed["wy"].shape), fixed_spec(packed["by"].shape),
        fixed_spec(packed["wh"].shape), fixed_spec(packed["bh"].shape),
        fixed_spec(packed["woz"].shape),
    ]
    out_spec = pl.BlockSpec((TB, 2 * NPAD), lambda i: (i, 0))

    kernel = functools.partial(gmvae_kernel, tau=float(tau),
                               d_out=d_out, num_cat=num_cat, mxu_dtype=mxu_dtype)

    buf = pl.pallas_call(
        kernel,
        out_shape=jax.ShapeDtypeStruct((Bp, 2 * NPAD), jnp.float32),
        grid=grid,
        in_specs=in_specs,
        out_specs=out_spec,
        compiler_params=pltpu.CompilerParams(
            dimension_semantics=("parallel",)),   # shards batch across TCs on v7x
    )(xk, g, eps,
      packed["wx"], packed["bx"], packed["wy"], packed["by"],
      packed["wh"], packed["bh"], packed["woz"])

    # lane-dense output unpack (XLA slices, outside the kernel)
    out = buf[:B, :d_out]
    y_probs = buf[:B, NPAD:NPAD + num_cat]
    total_kl = buf[:B, NPAD + num_cat]
    kl_y = buf[:B, NPAD + num_cat + 1]
    kl_z = buf[:B, NPAD + num_cat + 2]

    # infos stays on device: no float()/.item() host syncs (caller decides when
    # to materialize).  TODO(synk): reference's .detach().cpu() host copies are
    # intentionally not reproduced.
    infos = dict(
        enc_x=out,
        enc_x_cat=y_probs,
        gmvae_kl_y=jnp.mean(kl_y),
        gmvae_kl_z=jnp.mean(kl_z),
        gmvae_kl_total=jnp.mean(total_kl),
    )
    return out, total_kl, infos


if __name__ == "__main__":
    input_dim, output_dim, num_cat, batch = 32, 16, 8, 8

    root = jax.random.PRNGKey(0)
    k_param, k_x, k_noise = jax.random.split(root, 3)

    raw = init_params(k_param, input_dim, output_dim, num_cat)
    # pass mxu_dtype=jnp.bfloat16 here for large batches on v6e/v7x
    packed = pack_params(raw, mxu_dtype=jnp.float32)
    x = jax.random.normal(k_x, (batch, input_dim), dtype=jnp.float32)

    out, total_kl, infos = gmvae_forward(x, packed, k_noise, tau=1.0)
    jax.block_until_ready((out, total_kl, infos))

    assert out.shape == (batch, output_dim)
    assert total_kl.shape == (batch,)
    assert infos["enc_x_cat"].shape == (batch, num_cat)
    assert bool(jnp.all(jnp.isfinite(out)))
    assert bool(jnp.all(jnp.isfinite(total_kl)))
    print("KERNEL_OK")
</pallas_src>

<mosaic_0001>
module attributes {stable_mosaic.version = 11 : i64} {
  func.func @gmvae_kernel(%arg0: i32, %arg1: memref<8x32xf32, #tpu.memory_space<vmem>>, %arg2: memref<8x128xf32, #tpu.memory_space<vmem>>, %arg3: memref<8x128xf32, #tpu.memory_space<vmem>>, %arg4: memref<32x256xf32, #tpu.memory_space<vmem>>, %arg5: memref<1x256xf32, #tpu.memory_space<vmem>>, %arg6: memref<128x512xf32, #tpu.memory_space<vmem>>, %arg7: memref<1x512xf32, #tpu.memory_space<vmem>>, %arg8: memref<128x256xf32, #tpu.memory_space<vmem>>, %arg9: memref<1x256xf32, #tpu.memory_space<vmem>>, %arg10: memref<128x128xf32, #tpu.memory_space<vmem>>, %arg11: memref<8x256xf32, #tpu.memory_space<vmem>>) attributes {dimension_semantics = [#tpu.dimension_semantics<parallel>], iteration_bounds = array<i64: 1>, scalar_prefetch = 0 : i64, scratch_operands = 0 : i64, tpu.core_type = #tpu.core_type<tc>, window_params = [{transform_indices = @transform_0, window_bounds = array<i64: 8, 32>}, {transform_indices = @transform_1, window_bounds = array<i64: 8, 128>}, {transform_indices = @transform_2, window_bounds = array<i64: 8, 128>}, {pipeline_mode = #tpu.pipeline_mode<synchronous>, transform_indices = @transform_3, window_bounds = array<i64: 32, 256>}, {pipeline_mode = #tpu.pipeline_mode<synchronous>, transform_indices = @transform_4, window_bounds = array<i64: 1, 256>}, {pipeline_mode = #tpu.pipeline_mode<synchronous>, transform_indices = @transform_5, window_bounds = array<i64: 128, 512>}, {pipeline_mode = #tpu.pipeline_mode<synchronous>, transform_indices = @transform_6, window_bounds = array<i64: 1, 512>}, {pipeline_mode = #tpu.pipeline_mode<synchronous>, transform_indices = @transform_7, window_bounds = array<i64: 128, 256>}, {pipeline_mode = #tpu.pipeline_mode<synchronous>, transform_indices = @transform_8, window_bounds = array<i64: 1, 256>}, {pipeline_mode = #tpu.pipeline_mode<synchronous>, transform_indices = @transform_9, window_bounds = array<i64: 128, 128>}, {transform_indices = @transform_10, window_bounds = array<i64: 8, 256>}]} {
    %c0 = arith.constant 0 : index
    %c0_0 = arith.constant 0 : index
    %0 = vector.load %arg1[%c0, %c0_0] : memref<8x32xf32, #tpu.memory_space<vmem>>, vector<8x32xf32>
    %c0_1 = arith.constant 0 : index
    %c0_2 = arith.constant 0 : index
    %1 = vector.load %arg2[%c0_1, %c0_2] : memref<8x128xf32, #tpu.memory_space<vmem>>, vector<8x128xf32>
    %c0_3 = arith.constant 0 : index
    %c0_4 = arith.constant 0 : index
    %2 = vector.load %arg3[%c0_3, %c0_4] : memref<8x128xf32, #tpu.memory_space<vmem>>, vector<8x128xf32>
    %3 = tpu.iota {dimensions = array<i32: 1>} : vector<8x128xi32>
    %c8_i32 = arith.constant 8 : i32
    %4 = vector.broadcast %c8_i32 : i32 to vector<8x128xi32>
    %5 = arith.cmpi slt, %3, %4 : vector<8x128xi32>
    %c16_i32 = arith.constant 16 : i32
    %6 = vector.broadcast %c16_i32 : i32 to vector<8x128xi32>
    %7 = arith.cmpi slt, %3, %6 : vector<8x128xi32>
    %c0_5 = arith.constant 0 : index
    %c0_6 = arith.constant 0 : index
    %8 = vector.load %arg4[%c0_5, %c0_6] : memref<32x256xf32, #tpu.memory_space<vmem>>, vector<32x256xf32>
    %cst = arith.constant dense<0.000000e+00> : vector<8x256xf32>
    %9 = tpu.matmul %0, %8, %cst {dimension_numbers = #tpu.dot_dimension_numbers<[1], [0], [0], [1], [0, 0, 1, 1], [], []>} : vector<8x32xf32>, vector<32x256xf32>, vector<8x256xf32> -> vector<8x256xf32>
    %c0_7 = arith.constant 0 : index
    %c0_8 = arith.constant 0 : index
    %10 = vector.load %arg5[%c0_7, %c0_8] : memref<1x256xf32, #tpu.memory_space<vmem>>, vector<1x256xf32>
    %11 = vector.broadcast %10 : vector<1x256xf32> to vector<8x256xf32>
    %12 = arith.addf %9, %11 : vector<8x256xf32>
    %13 = vector.extract_strided_slice %12 {offsets = [0, 0], sizes = [8, 128], strides = [1, 1]} : vector<8x256xf32> to vector<8x128xf32>
    %cst_9 = arith.constant -1.000000e+30 : f32
    %14 = vector.broadcast %cst_9 : f32 to vector<8x128xf32>
    %15 = arith.select %5, %13, %14 : vector<8x128xi1>, vector<8x128xf32>
    %16 = vector.extract_strided_slice %12 {offsets = [0, 128], sizes = [8, 128], strides = [1, 1]} : vector<8x256xf32> to vector<8x128xf32>
    %17 = arith.addf %15, %1 : vector<8x128xf32>
    %cst_10 = arith.constant 1.000000e+00 : f32
    %18 = vector.broadcast %cst_10 : f32 to vector<8x128xf32>
    %19 = arith.mulf %17, %18 : vector<8x128xf32>
    %cst_11 = arith.constant dense<0xFF800000> : vector<8xf32>
    %20 = vector.multi_reduction <maximumf>, %19, %cst_11 [1] : vector<8x128xf32> to vector<8xf32>
    %21 = vector.shape_cast %20 : vector<8xf32> to vector<8x1xf32>
    %22 = vector.broadcast %21 : vector<8x1xf32> to vector<8x128xf32>
    %23 = arith.subf %19, %22 : vector<8x128xf32>
    %24 = math.exp %23 : vector<8x128xf32>
    %cst_12 = arith.constant 0.000000e+00 : f32
    %25 = vector.broadcast %cst_12 : f32 to vector<8x128xf32>
    %26 = arith.select %5, %24, %25 : vector<8x128xi1>, vector<8x128xf32>
    %cst_13 = arith.constant dense<0.000000e+00> : vector<8xf32>
    %27 = vector.multi_reduction <add>, %26, %cst_13 [1] : vector<8x128xf32> to vector<8xf32>
    %28 = vector.shape_cast %27 : vector<8xf32> to vector<8x1xf32>
    %29 = tpu.reciprocal %28 {approx = true} : vector<8x1xf32> -> vector<8x1xf32>
    %30 = vector.broadcast %29 : vector<8x1xf32> to vector<8x128xf32>
    %31 = arith.mulf %26, %30 : vector<8x128xf32>
    %c0_14 = arith.constant 0 : index
    %c0_15 = arith.constant 0 : index
    %32 = vector.load %arg6[%c0_14, %c0_15] : memref<128x512xf32, #tpu.memory_space<vmem>>, vector<128x512xf32>
    %cst_16 = arith.constant dense<0.000000e+00> : vector<8x512xf32>
    %33 = tpu.matmul %31, %32, %cst_16 {dimension_numbers = #tpu.dot_dimension_numbers<[1], [0], [0], [1], [0, 0, 1, 1], [], []>} : vector<8x128xf32>, vector<128x512xf32>, vector<8x512xf32> -> vector<8x512xf32>
    %c0_17 = arith.constant 0 : index
    %c0_18 = arith.constant 0 : index
    %34 = vector.load %arg7[%c0_17, %c0_18] : memref<1x512xf32, #tpu.memory_space<vmem>>, vector<1x512xf32>
    %35 = vector.broadcast %34 : vector<1x512xf32> to vector<8x512xf32>
    %36 = arith.addf %33, %35 : vector<8x512xf32>
    %37 = vector.extract_strided_slice %36 {offsets = [0, 0], sizes = [8, 128], strides = [1, 1]} : vector<8x512xf32> to vector<8x128xf32>
    %38 = vector.extract_strided_slice %36 {offsets = [0, 128], sizes = [8, 128], strides = [1, 1]} : vector<8x512xf32> to vector<8x128xf32>
    %39 = vector.extract_strided_slice %36 {offsets = [0, 256], sizes = [8, 128], strides = [1, 1]} : vector<8x512xf32> to vector<8x128xf32>
    %40 = vector.extract_strided_slice %36 {offsets = [0, 384], sizes = [8, 128], strides = [1, 1]} : vector<8x512xf32> to vector<8x128xf32>
    %41 = arith.addf %16, %37 : vector<8x128xf32>
    %cst_19 = arith.constant 0.000000e+00 : f32
    %42 = vector.broadcast %cst_19 : f32 to vector<8x128xf32>
    %43 = arith.maximumf %41, %42 : vector<8x128xf32>
    %c0_20 = arith.constant 0 : index
    %c0_21 = arith.constant 0 : index
    %44 = vector.load %arg8[%c0_20, %c0_21] : memref<128x256xf32, #tpu.memory_space<vmem>>, vector<128x256xf32>
    %cst_22 = arith.constant dense<0.000000e+00> : vector<8x256xf32>
    %45 = tpu.matmul %43, %44, %cst_22 {dimension_numbers = #tpu.dot_dimension_numbers<[1], [0], [0], [1], [0, 0, 1, 1], [], []>} : vector<8x128xf32>, vector<128x256xf32>, vector<8x256xf32> -> vector<8x256xf32>
    %c0_23 = arith.constant 0 : index
    %c0_24 = arith.constant 0 : index
    %46 = vector.load %arg9[%c0_23, %c0_24] : memref<1x256xf32, #tpu.memory_space<vmem>>, vector<1x256xf32>
    %47 = vector.broadcast %46 : vector<1x256xf32> to vector<8x256xf32>
    %48 = arith.addf %45, %47 : vector<8x256xf32>
    %49 = vector.extract_strided_slice %48 {offsets = [0, 0], sizes = [8, 128], strides = [1, 1]} : vector<8x256xf32> to vector<8x128xf32>
    %50 = vector.extract_strided_slice %48 {offsets = [0, 128], sizes = [8, 128], strides = [1, 1]} : vector<8x256xf32> to vector<8x128xf32>
    %cst_25 = arith.constant 0.000000e+00 : f32
    %51 = vector.broadcast %cst_25 : f32 to vector<8x128xf32>
    %52 = arith.maximumf %50, %51 : vector<8x128xf32>
    %53 = math.absf %50 : vector<8x128xf32>
    %cst_26 = arith.constant 0.000000e+00 : f32
    %54 = vector.broadcast %cst_26 : f32 to vector<8x128xf32>
    %55 = arith.subf %54, %53 : vector<8x128xf32>
    %56 = math.exp %55 : vector<8x128xf32>
    %57 = math.log1p %56 : vector<8x128xf32>
    %58 = arith.addf %52, %57 : vector<8x128xf32>
    %cst_27 = arith.constant 9.99999996E-13 : f32
    %59 = vector.broadcast %cst_27 : f32 to vector<8x128xf32>
    %60 = arith.maximumf %58, %59 : vector<8x128xf32>
    %cst_28 = arith.constant 0.000000e+00 : f32
    %61 = vector.broadcast %cst_28 : f32 to vector<8x128xf32>
    %62 = arith.maximumf %39, %61 : vector<8x128xf32>
    %63 = math.absf %39 : vector<8x128xf32>
    %cst_29 = arith.constant 0.000000e+00 : f32
    %64 = vector.broadcast %cst_29 : f32 to vector<8x128xf32>
    %65 = arith.subf %64, %63 : vector<8x128xf32>
    %66 = math.exp %65 : vector<8x128xf32>
    %67 = math.log1p %66 : vector<8x128xf32>
    %68 = arith.addf %62, %67 : vector<8x128xf32>
    %cst_30 = arith.constant 9.99999996E-13 : f32
    %69 = vector.broadcast %cst_30 : f32 to vector<8x128xf32>
    %70 = arith.maximumf %68, %69 : vector<8x128xf32>
    %71 = arith.mulf %60, %2 : vector<8x128xf32>
    %72 = arith.addf %49, %71 : vector<8x128xf32>
    %c0_31 = arith.constant 0 : index
    %c0_32 = arith.constant 0 : index
    %73 = vector.load %arg10[%c0_31, %c0_32] : memref<128x128xf32, #tpu.memory_space<vmem>>, vector<128x128xf32>
    %cst_33 = arith.constant dense<0.000000e+00> : vector<8x128xf32>
    %74 = tpu.matmul %72, %73, %cst_33 {dimension_numbers = #tpu.dot_dimension_numbers<[1], [0], [0], [1], [0, 0, 1, 1], [], []>} : vector<8x128xf32>, vector<128x128xf32>, vector<8x128xf32> -> vector<8x128xf32>
    %75 = arith.addf %74, %40 : vector<8x128xf32>
    %cst_34 = arith.constant dense<0xFF800000> : vector<8xf32>
    %76 = vector.multi_reduction <maximumf>, %15, %cst_34 [1] : vector<8x128xf32> to vector<8xf32>
    %77 = vector.shape_cast %76 : vector<8xf32> to vector<8x1xf32>
    %78 = vector.broadcast %77 : vector<8x1xf32> to vector<8x128xf32>
    %79 = arith.subf %15, %78 : vector<8x128xf32>
    %80 = math.exp %79 : vector<8x128xf32>
    %cst_35 = arith.constant 0.000000e+00 : f32
    %81 = vector.broadcast %cst_35 : f32 to vector<8x128xf32>
    %82 = arith.select %5, %80, %81 : vector<8x128xi1>, vector<8x128xf32>
    %cst_36 = arith.constant dense<0.000000e+00> : vector<8xf32>
    %83 = vector.multi_reduction <add>, %82, %cst_36 [1] : vector<8x128xf32> to vector<8xf32>
    %84 = vector.shape_cast %83 : vector<8xf32> to vector<8x1xf32>
    %85 = tpu.reciprocal %84 {approx = true} : vector<8x1xf32> -> vector<8x1xf32>
    %86 = vector.broadcast %85 : vector<8x1xf32> to vector<8x128xf32>
    %87 = arith.mulf %82, %86 : vector<8x128xf32>
    %88 = vector.broadcast %77 : vector<8x1xf32> to vector<8x128xf32>
    %89 = arith.subf %15, %88 : vector<8x128xf32>
    %90 = math.log %84 : vector<8x1xf32>
    %91 = vector.broadcast %90 : vector<8x1xf32> to vector<8x128xf32>
    %92 = arith.subf %89, %91 : vector<8x128xf32>
    %93 = arith.mulf %87, %92 : vector<8x128xf32>
    %cst_37 = arith.constant 0.000000e+00 : f32
    %94 = vector.broadcast %cst_37 : f32 to vector<8x128xf32>
    %95 = arith.select %5, %93, %94 : vector<8x128xi1>, vector<8x128xf32>
    %cst_38 = arith.constant dense<0.000000e+00> : vector<8xf32>
    %96 = vector.multi_reduction <add>, %95, %cst_38 [1] : vector<8x128xf32> to vector<8xf32>
    %97 = vector.shape_cast %96 : vector<8xf32> to vector<8x1xf32>
    %cst_39 = arith.constant 2.07944155 : f32
    %98 = vector.broadcast %cst_39 : f32 to vector<8x1xf32>
    %99 = arith.addf %97, %98 : vector<8x1xf32>
    %100 = arith.mulf %70, %70 : vector<8x128xf32>
    %101 = tpu.reciprocal %100 {approx = true} : vector<8x128xf32> -> vector<8x128xf32>
    %cst_40 = arith.constant 5.000000e-01 : f32
    %102 = vector.broadcast %cst_40 : f32 to vector<8x128xf32>
    %103 = arith.mulf %102, %101 : vector<8x128xf32>
    %104 = math.log %70 : vector<8x128xf32>
    %105 = math.log %60 : vector<8x128xf32>
    %106 = arith.subf %104, %105 : vector<8x128xf32>
    %107 = arith.mulf %60, %60 : vector<8x128xf32>
    %108 = arith.subf %49, %38 : vector<8x128xf32>
    %109 = arith.mulf %108, %108 : vector<8x128xf32>
    %110 = arith.addf %107, %109 : vector<8x128xf32>
    %111 = arith.mulf %110, %103 : vector<8x128xf32>
    %112 = arith.addf %106, %111 : vector<8x128xf32>
    %cst_41 = arith.constant 5.000000e-01 : f32
    %113 = vector.broadcast %cst_41 : f32 to vector<8x128xf32>
    %114 = arith.subf %112, %113 : vector<8x128xf32>
    %cst_42 = arith.constant 0.000000e+00 : f32
    %115 = vector.broadcast %cst_42 : f32 to vector<8x128xf32>
    %116 = arith.select %7, %114, %115 : vector<8x128xi1>, vector<8x128xf32>
    %cst_43 = arith.constant dense<0.000000e+00> : vector<8xf32>
    %117 = vector.multi_reduction <add>, %116, %cst_43 [1] : vector<8x128xf32> to vector<8xf32>
    %118 = vector.shape_cast %117 : vector<8xf32> to vector<8x1xf32>
    %119 = arith.addf %99, %118 : vector<8x1xf32>
    %c8_i32_44 = arith.constant 8 : i32
    %120 = vector.broadcast %c8_i32_44 : i32 to vector<8x128xi32>
    %121 = arith.cmpi eq, %3, %120 : vector<8x128xi32>
    %cst_45 = arith.constant 0.000000e+00 : f32
    %122 = vector.shape_cast %119 : vector<8x1xf32> to vector<8x1xf32>
    %123 = vector.broadcast %122 : vector<8x1xf32> to vector<8x128xf32>
    %124 = vector.broadcast %cst_45 : f32 to vector<8x128xf32>
    %125 = arith.select %121, %123, %124 : vector<8x128xi1>, vector<8x128xf32>
    %126 = arith.addf %87, %125 : vector<8x128xf32>
    %c9_i32 = arith.constant 9 : i32
    %127 = vector.broadcast %c9_i32 : i32 to vector<8x128xi32>
    %128 = arith.cmpi eq, %3, %127 : vector<8x128xi32>
    %cst_46 = arith.constant 0.000000e+00 : f32
    %129 = vector.shape_cast %99 : vector<8x1xf32> to vector<8x1xf32>
    %130 = vector.broadcast %129 : vector<8x1xf32> to vector<8x128xf32>
    %131 = vector.broadcast %cst_46 : f32 to vector<8x128xf32>
    %132 = arith.select %128, %130, %131 : vector<8x128xi1>, vector<8x128xf32>
    %133 = arith.addf %126, %132 : vector<8x128xf32>
    %c10_i32 = arith.constant 10 : i32
    %134 = vector.broadcast %c10_i32 : i32 to vector<8x128xi32>
    %135 = arith.cmpi eq, %3, %134 : vector<8x128xi32>
    %cst_47 = arith.constant 0.000000e+00 : f32
    %136 = vector.shape_cast %118 : vector<8x1xf32> to vector<8x1xf32>
    %137 = vector.broadcast %136 : vector<8x1xf32> to vector<8x128xf32>
    %138 = vector.broadcast %cst_47 : f32 to vector<8x128xf32>
    %139 = arith.select %135, %137, %138 : vector<8x128xi1>, vector<8x128xf32>
    %140 = arith.addf %133, %139 : vector<8x128xf32>
    %c0_48 = arith.constant 0 : index
    %c0_49 = arith.constant 0 : index
    %141 = vector.load %arg11[%c0_48, %c0_49] : memref<8x256xf32, #tpu.memory_space<vmem>>, vector<8x128xf32>
    tpu.vector_store %arg11[%c0_48, %c0_49], %75 {strides = array<i32>} : memref<8x256xf32, #tpu.memory_space<vmem>>, vector<8x128xf32>,
    %c0_50 = arith.constant 0 : index
    %c128 = arith.constant 128 : index
    %142 = vector.load %arg11[%c0_50, %c128] : memref<8x256xf32, #tpu.memory_space<vmem>>, vector<8x128xf32>
    tpu.vector_store %arg11[%c0_50, %c128], %140 {strides = array<i32>} : memref<8x256xf32, #tpu.memory_space<vmem>>, vector<8x128xf32>,
    return
  }
  func.func @transform_0(%arg0: i32) -> (i32, i32) {
    %c0_i32 = arith.constant 0 : i32
    %c0_i32_0 = arith.constant 0 : i32
    return %arg0, %c0_i32 : i32, i32
  }
  func.func @transform_1(%arg0: i32) -> (i32, i32) {
    %c0_i32 = arith.constant 0 : i32
    %c0_i32_0 = arith.constant 0 : i32
    return %arg0, %c0_i32 : i32, i32
  }
  func.func @transform_2(%arg0: i32) -> (i32, i32) {
    %c0_i32 = arith.constant 0 : i32
    %c0_i32_0 = arith.constant 0 : i32
    return %arg0, %c0_i32 : i32, i32
  }
  func.func @transform_3(%arg0: i32) -> (i32, i32) {
    %c0_i32 = arith.constant 0 : i32
    %c0_i32_0 = arith.constant 0 : i32
    %c0_i32_1 = arith.constant 0 : i32
    return %c0_i32, %c0_i32_0 : i32, i32
  }
  func.func @transform_4(%arg0: i32) -> (i32, i32) {
    %c0_i32 = arith.constant 0 : i32
    %c0_i32_0 = arith.constant 0 : i32
    %c0_i32_1 = arith.constant 0 : i32
    return %c0_i32, %c0_i32_0 : i32, i32
  }
  func.func @transform_5(%arg0: i32) -> (i32, i32) {
    %c0_i32 = arith.constant 0 : i32
    %c0_i32_0 = arith.constant 0 : i32
    %c0_i32_1 = arith.constant 0 : i32
    return %c0_i32, %c0_i32_0 : i32, i32
  }
  func.func @transform_6(%arg0: i32) -> (i32, i32) {
    %c0_i32 = arith.constant 0 : i32
    %c0_i32_0 = arith.constant 0 : i32
    %c0_i32_1 = arith.constant 0 : i32
    return %c0_i32, %c0_i32_0 : i32, i32
  }
  func.func @transform_7(%arg0: i32) -> (i32, i32) {
    %c0_i32 = arith.constant 0 : i32
    %c0_i32_0 = arith.constant 0 : i32
    %c0_i32_1 = arith.constant 0 : i32
    return %c0_i32, %c0_i32_0 : i32, i32
  }
  func.func @transform_8(%arg0: i32) -> (i32, i32) {
    %c0_i32 = arith.constant 0 : i32
    %c0_i32_0 = arith.constant 0 : i32
    %c0_i32_1 = arith.constant 0 : i32
    return %c0_i32, %c0_i32_0 : i32, i32
  }
  func.func @transform_9(%arg0: i32) -> (i32, i32) {
    %c0_i32 = arith.constant 0 : i32
    %c0_i32_0 = arith.constant 0 : i32
    %c0_i32_1 = arith.constant 0 : i32
    return %c0_i32, %c0_i32_0 : i32, i32
  }
  func.func @transform_10(%arg0: i32) -> (i32, i32) {
    %c0_i32 = arith.constant 0 : i32
    %c0_i32_0 = arith.constant 0 : i32
    return %arg0, %c0_i32 : i32, i32
  }
}

</mosaic_0001>

<bundles_post_ra>
// kernel: tpu_custom_call.1
= control target key start
LH: loop header
LB: loop body
LE: loop exit
PB: predicated region body
PF: predicated region fallthrough
CT: control target
= control target key end

     0   :  { %15 = vsyncpa [#allocation3], 0  ;;  %s1445_s0 = inlined_call_operand.hbm [shape: f32[8,32], index: 0, kind: input, shape index: {}]   ;;  %s1446_s1 = inlined_call_operand.hbm [shape: f32[8,128], index: 1, kind: input, shape index: {}]   ;;  %s1447_s2 = inlined_call_operand.hbm [shape: f32[8,128], index: 2, kind: input, shape index: {}]   ;;  %s1448_s3 = inlined_call_operand.hbm [shape: f32[32,256], index: 3, kind: input, shape index: {}]   ;;  %s1449_s4 = inlined_call_operand.vmem [shape: f32[1,256], index: 4, kind: input, shape index: {}]   ;;  %s1450_s5 = inlined_call_operand.hbm [shape: f32[128,512], index: 5, kind: input, shape index: {}]   ;;  %s1451_s6 = inlined_call_operand.vmem [shape: f32[1,512], index: 6, kind: input, shape index: {}]   ;;  %s1452_s7 = inlined_call_operand.hbm [shape: f32[128,256], index: 7, kind: input, shape index: {}]   ;;  %s1453_s8 = inlined_call_operand.vmem [shape: f32[1,256], index: 8, kind: input, shape index: {}]   ;;  %s1454_s9 = inlined_call_operand.hbm [shape: f32[128,128], index: 9, kind: input, shape index: {}]   ;;  %s1455_s10 = inlined_call_operand.hbm [shape: f32[8,256], index: 10, kind: output, shape index: {}]  }
   0x1   :  { %16 = vsyncpa [#allocation6], 0 }
   0x2   :  { %17 = vsyncpa [#allocation9], 0 }
   0x3   :  { %18 = vsyncpa [#allocation12], 0 }
   0x4   :  { %19 = vsyncpa [#allocation4], 0  ;;  %s1179_s13 = smov [#allocation5]   ;;  %s1180_s15 = smov [#allocation8]  }
   0x5   :  { %s36_s14 = sshll.u32 %s1179_s13, 4  ;;  %s55_s16 = sshll.u32 %s1180_s15, 4  ;;  %s37_s14 = int_to_ptr.vmem [resolvable:$true] %s36_s14  ;;  %s1251_s16 = int_to_ptr.vmem [resolvable:$true] %s55_s16 }
   0x6   :  { %s993_s19 = scalar_lea.hbm %s1446_s1, 128 }
   0x7   :  { %p994_p0 = scmp.ne.s32.totalorder %s1446_s1, %s993_s19  ;;  %p997_p1 = scmp.lt.u32.totalorder %s993_s19, %s1446_s1 }
   0x9   :  { %p999_p2 = pnand %p997_p1, %p994_p0 }
   0xb   :  { %1002 = shalt.err (!%p999_p2)
}
   0xc   :  { %s1003_s24 = scalar_lea.vmem %s37_s14, 128  ;;  %p1008_p4 = scmp.lt.s32.totalorder %s37_s14, %s37_s14 }
   0xd   :  { %p1004_p3 = scmp.ne.s32.totalorder %s37_s14, %s1003_s24  ;;  %p1009_p5 = scmp.lt.s32.totalorder %s1003_s24, %s1003_s24 }
   0xf   :  { %p1010_p6 = por %p1009_p5, %p1008_p4 }
  0x11   :  { %p1011_p7 = pnand %p1010_p6, %p1004_p3 }
  0x13   :  { %1014 = shalt.err (!%p1011_p7)
}
  0x14   :  { %39 = dma.hbm_to_vmem [thread:$0]  %s1446_s1, 128, %s37_s14, [#allocation6]  }
  0x15   :  { %s1015_s29 = scalar_lea.hbm %s1448_s3, 1024 }
  0x16   :  { %p1016_p8 = scmp.ne.s32.totalorder %s1448_s3, %s1015_s29  ;;  %p1019_p9 = scmp.lt.u32.totalorder %s1015_s29, %s1448_s3 }
  0x18   :  { %p1021_p10 = pnand %p1019_p9, %p1016_p8 }
  0x1a   :  { %1024 = shalt.err (!%p1021_p10)
}
  0x1b   :  { %s1025_s15 = scalar_lea.vmem %s1251_s16, 1024  ;;  %p1030_p12 = scmp.lt.s32.totalorder %s1251_s16, %s1251_s16 }
  0x1c   :  { %p1026_p11 = scmp.ne.s32.totalorder %s1251_s16, %s1025_s15  ;;  %p1031_p13 = scmp.lt.s32.totalorder %s1025_s15, %s1025_s15 }
  0x1e   :  { %p1032_p0 = por %p1031_p13, %p1030_p12 }
  0x20   :  { %p1033_p1 = pnand %p1032_p0, %p1026_p11 }
  0x22   :  { %1036 = shalt.err (!%p1033_p1)
}
  0x23   :  { %s1181_s1 = smov 256   ;;  %s1182_s14 = smov 16  }
  0x24   :  { %61 = dma.hbm_to_vmem [thread:$0]  %s1448_s3, 1024, %s1251_s16, [#allocation9], %s1181_s1, %s1181_s1, %s1182_s14  }
  0x25   :  { %s1183_s19 = smov [#allocation11]   ;;  %s1184_s21 = smov [#allocation2]  }
  0x26   :  { %s83_s20 = sshll.u32 %s1183_s19, 4  ;;  %s26_s22 = sshll.u32 %s1184_s21, 4  ;;  %s84_s20 = int_to_ptr.vmem [resolvable:$true] %s83_s20  ;;  %s27_s22 = int_to_ptr.vmem [resolvable:$true] %s26_s22 }
  0x27   :  { %s1037_s25 = scalar_lea.hbm %s1452_s7, 4096 }
  0x28   :  { %p1038_p2 = scmp.ne.s32.totalorder %s1452_s7, %s1037_s25  ;;  %p1041_p3 = scmp.lt.u32.totalorder %s1037_s25, %s1452_s7 }
  0x2a   :  { %p1043_p4 = pnand %p1041_p3, %p1038_p2 }
  0x2c   :  { %1046 = shalt.err (!%p1043_p4)
}
  0x2d   :  { %s1047_s3 = scalar_lea.vmem %s84_s20, 4096  ;;  %p1052_p6 = scmp.lt.s32.totalorder %s84_s20, %s84_s20 }
  0x2e   :  { %p1048_p5 = scmp.ne.s32.totalorder %s84_s20, %s1047_s3  ;;  %p1053_p7 = scmp.lt.s32.totalorder %s1047_s3, %s1047_s3 }
  0x30   :  { %p1054_p8 = por %p1053_p7, %p1052_p6 }
  0x32   :  { %p1055_p9 = pnand %p1054_p8, %p1048_p5 }
  0x34   :  { %1058 = shalt.err (!%p1055_p9)
}
  0x35   :  { %89 = dma.hbm_to_vmem [thread:$0]  %s1452_s7, 4096, %s84_s20, [#allocation12], %s1181_s1, %s1181_s1, %s1182_s14  }
  0x36   :  { %s1059_s13 = scalar_lea.hbm %s1445_s0, 128 }
  0x37   :  { %p1060_p10 = scmp.ne.s32.totalorder %s1445_s0, %s1059_s13  ;;  %p1063_p11 = scmp.lt.u32.totalorder %s1059_s13, %s1445_s0 }
  0x39   :  { %p1065_p12 = pnand %p1063_p11, %p1060_p10 }
  0x3b   :  { %1068 = shalt.err (!%p1065_p12)
}
  0x3c   :  { %s1069_s21 = scalar_lea.vmem %s27_s22, 128  ;;  %p1074_p0 = scmp.lt.s32.totalorder %s27_s22, %s27_s22 }
  0x3d   :  { %p1070_p13 = scmp.ne.s32.totalorder %s27_s22, %s1069_s21  ;;  %p1075_p1 = scmp.lt.s32.totalorder %s1069_s21, %s1069_s21 }
  0x3f   :  { %p1076_p2 = por %p1075_p1, %p1074_p0 }
  0x41   :  { %p1077_p3 = pnand %p1076_p2, %p1070_p13 }
  0x43   :  { %1080 = shalt.err (!%p1077_p3)
}
  0x44   :  { %29 = dma.hbm_to_vmem [thread:$0]  %s1445_s0, 128, %s27_s22, [#allocation3]  }
  0x45   :  { %s1185_s14 = smov [#allocation7]   ;;  %s1186_s23 = smov [#allocation10]  }
  0x46   :  { %s46_s20 = sshll.u32 %s1185_s14, 4  ;;  %s69_s24 = sshll.u32 %s1186_s23, 4  ;;  %s47_s20 = int_to_ptr.vmem [resolvable:$true] %s46_s20  ;;  %s1306_s24 = int_to_ptr.vmem [resolvable:$true] %s69_s24 }
  0x47   :  { %s1081_s27 = scalar_lea.hbm %s1447_s2, 128 }
  0x48   :  { %p1082_p4 = scmp.ne.s32.totalorder %s1447_s2, %s1081_s27  ;;  %p1085_p5 = scmp.lt.u32.totalorder %s1081_s27, %s1447_s2 }
  0x4a   :  { %p1087_p6 = pnand %p1085_p5, %p1082_p4 }
  0x4c   :  { %1090 = shalt.err (!%p1087_p6)
}
  0x4d   :  { %s1091_s0 = scalar_lea.vmem %s47_s20, 128  ;;  %p1096_p8 = scmp.lt.s32.totalorder %s47_s20, %s47_s20 }
  0x4e   :  { %p1092_p7 = scmp.ne.s32.totalorder %s47_s20, %s1091_s0  ;;  %p1097_p9 = scmp.lt.s32.totalorder %s1091_s0, %s1091_s0 }
  0x50   :  { %p1098_p10 = por %p1097_p9, %p1096_p8 }
  0x52   :  { %p1099_p11 = pnand %p1098_p10, %p1092_p7 }
  0x54   :  { %1102 = shalt.err (!%p1099_p11)
}
  0x55   :  { %49 = dma.hbm_to_vmem [thread:$0]  %s1447_s2, 128, %s47_s20, [#allocation6]  }
  0x56   :  { %s1103_s13 = scalar_lea.hbm %s1450_s5, 8192 }
  0x57   :  { %p1104_p12 = scmp.ne.s32.totalorder %s1450_s5, %s1103_s13  ;;  %p1107_p13 = scmp.lt.u32.totalorder %s1103_s13, %s1450_s5 }
  0x59   :  { %p1109_p0 = pnand %p1107_p13, %p1104_p12 }
  0x5b   :  { %1112 = shalt.err (!%p1109_p0)
}
  0x5c   :  { %s1113_s21 = scalar_lea.vmem %s1306_s24, 8192  ;;  %p1118_p2 = scmp.lt.s32.totalorder %s1306_s24, %s1306_s24 }
  0x5d   :  { %p1114_p1 = scmp.ne.s32.totalorder %s1306_s24, %s1113_s21  ;;  %p1119_p3 = scmp.lt.s32.totalorder %s1113_s21, %s1113_s21 }
  0x5f   :  { %p1120_p4 = por %p1119_p3, %p1118_p2 }
  0x61   :  { %p1121_p5 = pnand %p1120_p4, %p1114_p1 }
  0x63   :  { %1124 = shalt.err (!%p1121_p5)
}
  0x64   :  { %s1187_s2 = smov 512   ;;  %s1188_s7 = smov 32  }
  0x65   :  { %75 = dma.hbm_to_vmem [thread:$0]  %s1450_s5, 8192, %s1306_s24, [#allocation9], %s1187_s2, %s1187_s2, %s1188_s7  }
  0x66   :  { %s1189_s20 = smov [#allocation13]   ;;  %s1125_s27 = scalar_lea.hbm %s1454_s9, 2048 }
  0x67   :  { %s97_s23 = sshll.u32 %s1189_s20, 4  ;;  %p1126_p6 = scmp.ne.s32.totalorder %s1454_s9, %s1125_s27  ;;  %s98_s23 = int_to_ptr.vmem [resolvable:$true] %s97_s23 }
  0x68   :  { %p1129_p7 = scmp.lt.u32.totalorder %s1125_s27, %s1454_s9 }
  0x6a   :  { %p1131_p8 = pnand %p1129_p7, %p1126_p6 }
  0x6c   :  { %1134 = shalt.err (!%p1131_p8)
}
  0x6d   :  { %s1135_s0 = scalar_lea.vmem %s98_s23, 2048  ;;  %p1140_p10 = scmp.lt.s32.totalorder %s98_s23, %s98_s23 }
  0x6e   :  { %p1136_p9 = scmp.ne.s32.totalorder %s98_s23, %s1135_s0  ;;  %p1141_p11 = scmp.lt.s32.totalorder %s1135_s0, %s1135_s0 }
  0x70   :  { %p1142_p12 = por %p1141_p11, %p1140_p10 }
  0x72   :  { %p1143_p13 = pnand %p1142_p12, %p1136_p9 }
  0x74   :  { %1146 = shalt.err (!%p1143_p13)
}
  0x75   :  { %s1190_s5 = smov 128   ;;  %s1191_s24 = smov 8  }
  0x76   :  { %103 = dma.hbm_to_vmem [thread:$0]  %s1454_s9, 2048, %s98_s23, [#allocation12], %s1190_s5, %s1190_s5, %s1191_s24  }
  0x77   :  { %1169 = dma.done.wait [#allocation3], 128  }
  0x78   :  { %1170 = vsyncadd [#allocation3], 4294967168 }
  0x79   :  { %1171 = dma.done.wait [#allocation6], 256  }
  0x7a   :  { %1172 = vsyncadd [#allocation6], 4294967040 }
  0x7b   :  { %1173 = dma.done.wait [#allocation9], 9216  }
  0x7c   :  { %1174 = vsyncadd [#allocation9], 4294958080 }
  0x7d   :  { %1175 = dma.done.wait [#allocation12], 6144  }
  0x7e   :  { %1176 = vsyncadd [#allocation12], 4294961152  ;;  %v1192_v0 = vmov 0.0   ;;  %v133_v1 = vld [vmem:[#allocation8 + $0x8] sm:$0xff]  ;;  %v135_v2 = vld [vmem:[#allocation8 + $0x18] sm:$0xff]  ;;  %vm152_vm0 = vcmask 261120   ;;  %v128_v14 = vlaneseq }
  0x7f   :  { %220 = vmatprep.mubr.f32.mxu0 %v1192_v0  ;;  %389 = vmatprep.mubr.f32.mxu1 %v1192_v0  ;;  %v132_v3 = vld [vmem:[#allocation8] sm:$0xff]  ;;  %v824_v4 = vpack.c.bf16 %v135_v2, %v133_v1  ;;  %v134_v5 = vld [vmem:[#allocation8 + $0x10] sm:$0xff]  ;;  %v137_v6 = vld [vmem:[#allocation8 + $0x28] sm:$0xff]  ;;  %vm1194_vm2 = vmmov 0  }
  0x80   :  { %v139_v7 = vld [vmem:[#allocation8 + $0x38] sm:$0xff]  ;;  %v826_v8 = vpack.c.bf16 %v134_v5, %v132_v3  ;;  %v136_v10 = vld [vmem:[#allocation8 + $0x20] sm:$0xff]  ;;  %v138_v11 = vld [vmem:[#allocation8 + $0x30] sm:$0xff]  ;;  %v1352_v15 = vshrl.u32 %v128_v14, 7  ;;  %v1362_v18 = vand.u32 127, %v128_v14 }
  0x81   :  { %v828_v9 = vpack.c.bf16 %v139_v7, %v137_v6  ;;  %825 = vmatprep.subr.bf16.mxu0 %v824_v4  ;;  %v830_v12 = vpack.c.bf16 %v138_v11, %v136_v10  ;;  %v125_v13 = vld [vmem:[#allocation2] sm:$0xff]  ;;  %v126_v23 = vld [vmem:[#allocation5] sm:$0xff]  ;;  %v242_v28 = vld [vmem:[#allocation10 + $0x18] sm:$0xff] }
  0x82   :  { %827 = vmatpush1.bf16.msra.mxu0 %v826_v8  ;;  %v1355_v16 = vsub.s32 0, %v1352_v15  ;;  %v1360_v17 = vld [vmem:[%s1449_s4] sm:$0x3]  ;;  %vm130_vm1 = vcmp.lt.s32.totalorder %v1362_v18, 8  ;;  %v246_v30 = vld [vmem:[#allocation10 + $0x38] sm:$0xff]  ;;  %v239_v31 = vld [vmem:[#allocation10] sm:$0xff] }
  0x83   :  { %829 = vmatprep.subr.bf16.mxu0 %v828_v9  ;;  %v240_v26 = vld [vmem:[#allocation10 + $0x8] sm:$0xff]  ;;  %v243_v32 = vld [vmem:[#allocation10 + $0x20] sm:$0xff]  ;;  %v864_v33 = vpack.c.bf16 %v246_v30, %v242_v28  ;;  %v241_v35 = vld [vmem:[#allocation10 + $0x10] sm:$0xff]  ;;  %vm131_vm5 = vcmp.lt.s32.totalorder %v1362_v18, 16  ;;  %vm741_vm6 = vcmp.eq.s32.totalorder %v1362_v18, 8  ;;  %vm744_vm7 = vcmp.eq.s32.totalorder %v1362_v18, 9 }
  0x84   :  { %v145_v19 = vrot.slane %v1360_v17, %v1355_v16  ;;  %v244_v27 = vld [vmem:[#allocation10 + $0x28] sm:$0xff]  ;;  %v834_v34 = vpack.c.bf16 %v243_v32, %v239_v31  ;;  %v245_v36 = vld [vmem:[#allocation10 + $0x30] sm:$0xff]  ;;  %v250_v40 = vld [vmem:[#allocation10 + $0x58] sm:$0xff]  ;;  %vm747_vm8 = vcmp.eq.s32.totalorder %v1362_v18, 10 }
  0x85   :  { %v832_v29 = vpack.c.bf16 %v244_v27, %v240_v26  ;;  %v248_v37 = vld [vmem:[#allocation10 + $0x48] sm:$0xff]  ;;  %v866_v38 = vpack.c.bf16 %v245_v36, %v241_v35  ;;  %v254_v41 = vld [vmem:[#allocation10 + $0x78] sm:$0xff]  ;;  %v247_v44 = vld [vmem:[#allocation10 + $0x40] sm:$0xff] }
  0x86   :  { %831 = vmatpush1.bf16.msra.mxu0 %v830_v12  ;;  %v252_v39 = vld [vmem:[#allocation10 + $0x68] sm:$0xff]  ;;  %v868_v43 = vpack.c.bf16 %v254_v41, %v250_v40  ;;  %v251_v45 = vld [vmem:[#allocation10 + $0x60] sm:$0xff]  ;;  %v249_v46 = vld [vmem:[#allocation10 + $0x50] sm:$0xff] }
  0x87   :  { %833 = vmatprep.subr.bf16.mxu1 %v832_v29  ;;  %865 = vmatprep.subr.bf16.mxu0 %v864_v33  ;;  %v836_v42 = vpack.c.bf16 %v252_v39, %v248_v37  ;;  %v838_v47 = vpack.c.bf16 %v251_v45, %v247_v44  ;;  %v253_v48 = vld [vmem:[#allocation10 + $0x70] sm:$0xff]  ;;  %v256_v49 = vld [vmem:[#allocation10 + $0x88] sm:$0xff]  ;;  %v258_v53 = vld [vmem:[#allocation10 + $0x98] sm:$0xff] }
  0x88   :  { %835 = vmatpush1.bf16.msra.mxu1 %v834_v34  ;;  %v260_v50 = vld [vmem:[#allocation10 + $0xa8] sm:$0xff]  ;;  %v870_v51 = vpack.c.bf16 %v253_v48, %v249_v46  ;;  %v262_v54 = vld [vmem:[#allocation10 + $0xb8] sm:$0xff]  ;;  %v255_v55 = vld [vmem:[#allocation10 + $0x80] sm:$0xff] }
  0x89   :  { %770 = vmatmul.mubr.msk.f32.vlgmr.msra.gmra.mrb[0].mxu0 %vm152_vm0, %v125_v13  ;;  %837 = vmatprep.subr.bf16.mxu1 %v836_v42  ;;  %v840_v52 = vpack.c.bf16 %v260_v50, %v256_v49  ;;  %v872_v56 = vpack.c.bf16 %v262_v54, %v258_v53  ;;  %v259_v57 = vld [vmem:[#allocation10 + $0xa0] sm:$0xff]  ;;  %v257_v58 = vld [vmem:[#allocation10 + $0x90] sm:$0xff]  ;;  %v264_v61 = vld [vmem:[#allocation10 + $0xc8] sm:$0xff] }
  0x8a   :  { %460 = vmatprep.mubr.f32.mxu0 %v1192_v0  ;;  %867 = vmatpush1.bf16.msra.mxu0 %v866_v38  ;;  %v261_v59 = vld [vmem:[#allocation10 + $0xb0] sm:$0xff]  ;;  %v842_v60 = vpack.c.bf16 %v259_v57, %v255_v55  ;;  %v268_v62 = vld [vmem:[#allocation10 + $0xe8] sm:$0xff]  ;;  %v266_v63 = vld [vmem:[#allocation10 + $0xd8] sm:$0xff] }
  0x8b   :  { %869 = vmatprep.subr.bf16.mxu0 %v868_v43  ;;  %v874_v1 = vpack.c.bf16 %v261_v59, %v257_v58  ;;  %v844_v2 = vpack.c.bf16 %v268_v62, %v264_v61  ;;  %v270_v3 = vld [vmem:[#allocation10 + $0xf8] sm:$0xff]  ;;  %v263_v4 = vld [vmem:[#allocation10 + $0xc0] sm:$0xff]  ;;  %v265_v7 = vld [vmem:[#allocation10 + $0xd0] sm:$0xff] }
  0x8c   :  { %839 = vmatpush1.bf16.msra.mxu1 %v838_v47  ;;  %v267_v5 = vld [vmem:[#allocation10 + $0xe0] sm:$0xff]  ;;  %v876_v6 = vpack.c.bf16 %v270_v3, %v266_v63  ;;  %v269_v8 = vld [vmem:[#allocation10 + $0xf0] sm:$0xff]  ;;  %v272_v9 = vld [vmem:[#allocation10 + $0x108] sm:$0xff] }
  0x8d   :  { %841 = vmatprep.subr.bf16.mxu1 %v840_v52  ;;  %v276_v10 = vld [vmem:[#allocation10 + $0x128] sm:$0xff]  ;;  %v274_v11 = vld [vmem:[#allocation10 + $0x118] sm:$0xff]  ;;  %v846_v13 = vpack.c.bf16 %v267_v5, %v263_v4  ;;  %v878_v14 = vpack.c.bf16 %v269_v8, %v265_v7  ;;  %v271_v33 = vld [vmem:[#allocation10 + $0x100] sm:$0xff] }
  0x8e   :  { %871 = vmatpush1.bf16.msra.mxu0 %v870_v51  ;;  %v278_v12 = vld [vmem:[#allocation10 + $0x138] sm:$0xff]  ;;  %v275_v34 = vld [vmem:[#allocation10 + $0x120] sm:$0xff]  ;;  %v277_v36 = vld [vmem:[#allocation10 + $0x130] sm:$0xff] }
  0x8f   :  { %873 = vmatprep.subr.bf16.mxu0 %v872_v56  ;;  %v850_v35 = vpack.c.bf16 %v275_v34, %v271_v33  ;;  %v280_v38 = vld [vmem:[#allocation10 + $0x148] sm:$0xff]  ;;  %v282_v40 = vld [vmem:[#allocation10 + $0x158] sm:$0xff]  ;;  %v279_v43 = vld [vmem:[#allocation10 + $0x140] sm:$0xff] }
  0x90   :  { %843 = vmatpush1.bf16.msra.mxu1 %v842_v60  ;;  %v284_v39 = vld [vmem:[#allocation10 + $0x168] sm:$0xff]  ;;  %v286_v42 = vld [vmem:[#allocation10 + $0x178] sm:$0xff]  ;;  %v283_v44 = vld [vmem:[#allocation10 + $0x160] sm:$0xff] }
  0x91   :  { %845 = vmatprep.subr.bf16.mxu1 %v844_v2  ;;  %v852_v41 = vpack.c.bf16 %v284_v39, %v280_v38  ;;  %v884_v45 = vpack.c.bf16 %v286_v42, %v282_v40  ;;  %v854_v46 = vpack.c.bf16 %v283_v44, %v279_v43  ;;  %v281_v47 = vld [vmem:[#allocation10 + $0x150] sm:$0xff]  ;;  %v288_v50 = vld [vmem:[#allocation10 + $0x188] sm:$0xff]  ;;  %v290_v52 = vld [vmem:[#allocation10 + $0x198] sm:$0xff] }
  0x92   :  { %875 = vmatpush1.bf16.msra.mxu0 %v874_v1  ;;  %v285_v48 = vld [vmem:[#allocation10 + $0x170] sm:$0xff]  ;;  %v292_v51 = vld [vmem:[#allocation10 + $0x1a8] sm:$0xff]  ;;  %v294_v54 = vld [vmem:[#allocation10 + $0x1b8] sm:$0xff] }
  0x93   :  { %877 = vmatprep.subr.bf16.mxu0 %v876_v6  ;;  %v886_v49 = vpack.c.bf16 %v285_v48, %v281_v47  ;;  %v856_v53 = vpack.c.bf16 %v292_v51, %v288_v50  ;;  %v287_v55 = vld [vmem:[#allocation10 + $0x180] sm:$0xff]  ;;  %v888_v57 = vpack.c.bf16 %v294_v54, %v290_v52  ;;  %v289_v59 = vld [vmem:[#allocation10 + $0x190] sm:$0xff]  ;;  %v296_v62 = vld [vmem:[#allocation10 + $0x1c8] sm:$0xff] }
  0x94   :  { %847 = vmatpush1.bf16.msra.mxu1 %v846_v13  ;;  %v291_v56 = vld [vmem:[#allocation10 + $0x1a0] sm:$0xff]  ;;  %v293_v60 = vld [vmem:[#allocation10 + $0x1b0] sm:$0xff]  ;;  %v300_v63 = vld [vmem:[#allocation10 + $0x1e8] sm:$0xff] }
  0x95   :  { %v858_v58 = vpack.c.bf16 %v291_v56, %v287_v55  ;;  %v890_v61 = vpack.c.bf16 %v293_v60, %v289_v59  ;;  %v298_v1 = vld [vmem:[#allocation10 + $0x1d8] sm:$0xff]  ;;  %v860_v2 = vpack.c.bf16 %v300_v63, %v296_v62  ;;  %v295_v4 = vld [vmem:[#allocation10 + $0x1c0] sm:$0xff]  ;;  %v297_v8 = vld [vmem:[#allocation10 + $0x1d0] sm:$0xff] }
  0x96   :  { %879 = vmatpush1.bf16.msra.mxu0 %v878_v14  ;;  %v302_v3 = vld [vmem:[#allocation10 + $0x1f8] sm:$0xff]  ;;  %v299_v5 = vld [vmem:[#allocation10 + $0x1e0] sm:$0xff]  ;;  %v478_v38 = vld [vmem:[#allocation11 + $0x48] sm:$0xff] }
  0x97   :  { %v892_v6 = vpack.c.bf16 %v302_v3, %v298_v1  ;;  %v862_v7 = vpack.c.bf16 %v299_v5, %v295_v4  ;;  %v469_v33 = vld [vmem:[#allocation11] sm:$0xff]  ;;  %v480_v39 = vld [vmem:[#allocation11 + $0x58] sm:$0xff]  ;;  %v479_v43 = vld [vmem:[#allocation11 + $0x50] sm:$0xff] }
  0x98   :  { %v477_v42 = vld [vmem:[#allocation11 + $0x40] sm:$0xff]  ;;  %v482_v44 = vld [vmem:[#allocation11 + $0x68] sm:$0xff]  ;;  %v488_v51 = vld [vmem:[#allocation11 + $0x98] sm:$0xff] }
  0x99   :  { %v481_v48 = vld [vmem:[#allocation11 + $0x60] sm:$0xff]  ;;  %v486_v50 = vld [vmem:[#allocation11 + $0x88] sm:$0xff]  ;;  %v487_v55 = vld [vmem:[#allocation11 + $0x90] sm:$0xff] }
  0x9a   :  { %v485_v54 = vld [vmem:[#allocation11 + $0x80] sm:$0xff]  ;;  %v490_v56 = vld [vmem:[#allocation11 + $0xa8] sm:$0xff]  ;;  %v496_v63 = vld [vmem:[#allocation11 + $0xd8] sm:$0xff] }
  0x9b   :  { %v489_v60 = vld [vmem:[#allocation11 + $0xa0] sm:$0xff]  ;;  %v494_v62 = vld [vmem:[#allocation11 + $0xc8] sm:$0xff]  ;;  %v495_v4 = vld [vmem:[#allocation11 + $0xd0] sm:$0xff] }
  0x9c   :  { %v493_v3 = vld [vmem:[#allocation11 + $0xc0] sm:$0xff] }
  0x9d   :  { %v922_v5 = vpack.c.bf16 %v495_v4, %v493_v3 }
 0x15c   :  { %v222_v20 = vpop.f32.mrb[0].mxu0 }
 0x15d   :  { %v223_v21 = vadd.f32 %v222_v20, %v145_v19  ;;  %v1367_v22 = vpop.f32.mrb[1].mxu0  ;;  %v848_v19 = vpack.c.bf16 %v276_v10, %v272_v9  ;;  %v880_v20 = vpack.c.bf16 %v278_v12, %v274_v11  ;;  %v301_v9 = vld [vmem:[#allocation10 + $0x1f0] sm:$0xff] }
 0x15e   :  { %v894_v10 = vpack.c.bf16 %v301_v9, %v297_v8  ;;  %v497_v9 = vld [vmem:[#allocation11 + $0xe0] sm:$0xff] }
 0x15f   :  { %v1371_v24 = vsel %vm130_vm1, %v223_v21, -1e+30  ;;  %849 = vmatprep.subr.bf16.mxu1 %v848_v19  ;;  %881 = vmatprep.subr.bf16.mxu0 %v880_v20 }
 0x160   :  { %704 = vmax.xlane.f32.xlu1 %v1371_v24  ;;  %v1375_v25 = vadd.f32 %v1371_v24, %v126_v23  ;;  %851 = vmatpush1.bf16.msra.mxu1 %v850_v35 }
 0x161   :  { %853 = vmatprep.subr.bf16.mxu1 %v852_v41  ;;  %v904_v41 = vpack.c.bf16 %v480_v39, %v478_v38  ;;  %v1193_v39 = vmov 0.0|0.0  }
 0x162   :  { %229 = vmax.xlane.f32.xlu0 %v1375_v25 }
 0x164   :  { %855 = vmatpush1.bf16.msra.mxu1 %v854_v46  ;;  %v906_v46 = vpack.c.bf16 %v479_v43, %v477_v42  ;;  %v622_v42 = vld [vmem:[#allocation13 + $0x20] sm:$0xff]  ;;  %v623_v43 = vld [vmem:[#allocation13 + $0x28] sm:$0xff] }
 0x165   :  { %857 = vmatprep.subr.bf16.mxu1 %v856_v53  ;;  %v912_v53 = vpack.c.bf16 %v488_v51, %v486_v50  ;;  %v628_v51 = vld [vmem:[#allocation13 + $0x50] sm:$0xff] }
 0x168   :  { %859 = vmatpush1.bf16.msra.mxu1 %v858_v58  ;;  %v914_v58 = vpack.c.bf16 %v487_v55, %v485_v54  ;;  %v630_v54 = vld [vmem:[#allocation13 + $0x60] sm:$0xff]  ;;  %v631_v55 = vld [vmem:[#allocation13 + $0x68] sm:$0xff] }
 0x169   :  { %861 = vmatprep.subr.bf16.mxu1 %v860_v2  ;;  %v920_v2 = vpack.c.bf16 %v496_v63, %v494_v62 }
 0x16c   :  { %863 = vmatpush1.bf16.msra.mxu1 %v862_v7  ;;  %v500_v7 = vld [vmem:[#allocation11 + $0xf8] sm:$0xff] }
 0x1ed   :  { %v705_v21 = vpop.xlane.xlu1 %704 }
 0x1ee   :  { %v1379_v23 = vsub.f32 %v1371_v24, %v705_v21 }
 0x1ef   :  { %v230_v26 = vpop.xlane.xlu0 %229 }
 0x1f0   :  { %v707_v27 = vmul.f32 1.442695, %v1379_v23  ;;  %v231_v28 = vsub.f32 %v1375_v25, %v230_v26  ;;  %v273_v25 = vld [vmem:[#allocation10 + $0x110] sm:$0xff] }
 0x1f1   :  { %v882_v37 = vpack.c.bf16 %v277_v36, %v273_v25  ;;  %v474_v25 = vld [vmem:[#allocation11 + $0x28] sm:$0xff] }
 0x1f2   :  { %969 = vpow2.f32 %v707_v27  ;;  %v232_v29 = vmul.f32 1.442695, %v231_v28 }
 0x1f3   :  { %883 = vmatpush1.bf16.msra.mxu0 %v882_v37  ;;  %v475_v37 = vld [vmem:[#allocation11 + $0x30] sm:$0xff] }
 0x1f4   :  { %971 = vpow2.f32 %v232_v29  ;;  %885 = vmatprep.subr.bf16.mxu0 %v884_v45  ;;  %v484_v45 = vld [vmem:[#allocation11 + $0x78] sm:$0xff] }
 0x1f5   :  { %v908_v47 = vpack.c.bf16 %v484_v45, %v482_v44  ;;  %v935_v44 = vpack.c.bf16 %v623_v43, %v622_v42  ;;  %v624_v45 = vld [vmem:[#allocation13 + $0x30] sm:$0xff] }
 0x1f7   :  { %887 = vmatpush1.bf16.msra.mxu0 %v886_v49  ;;  %v483_v49 = vld [vmem:[#allocation11 + $0x70] sm:$0xff] }
 0x1f8   :  { %889 = vmatprep.subr.bf16.mxu0 %v888_v57  ;;  %v910_v52 = vpack.c.bf16 %v483_v49, %v481_v48  ;;  %v492_v57 = vld [vmem:[#allocation11 + $0xb8] sm:$0xff]  ;;  %v626_v48 = vld [vmem:[#allocation13 + $0x40] sm:$0xff]  ;;  %v627_v49 = vld [vmem:[#allocation13 + $0x48] sm:$0xff] }
 0x1f9   :  { %v916_v59 = vpack.c.bf16 %v492_v57, %v490_v56  ;;  %v941_v50 = vpack.c.bf16 %v627_v49, %v626_v48  ;;  %v947_v56 = vpack.c.bf16 %v631_v55, %v630_v54  ;;  %v632_v57 = vld [vmem:[#allocation13 + $0x70] sm:$0xff] }
 0x1fb   :  { %891 = vmatpush1.bf16.msra.mxu0 %v890_v61  ;;  %v491_v61 = vld [vmem:[#allocation11 + $0xb0] sm:$0xff] }
 0x1fc   :  { %v970_v30 = vpop.eup %969  ;;  %893 = vmatprep.subr.bf16.mxu0 %v892_v6  ;;  %v918_v1 = vpack.c.bf16 %v491_v61, %v489_v60  ;;  %v498_v6 = vld [vmem:[#allocation11 + $0xe8] sm:$0xff] }
 0x1fd   :  { %v1385_v31 = vsel %vm130_vm1, %v970_v30, 0.0  ;;  %v470_v30 = vld [vmem:[#allocation11 + $0x8] sm:$0xff]  ;;  %v924_v8 = vpack.c.bf16 %v500_v7, %v498_v6 }
 0x1fe   :  { %v972_v32 = vpop.eup %971  ;;  %710 = vadd.xlane.f32.xlu1 %v1385_v31 }
 0x1ff   :  { %v1390_v24 = vsel %vm130_vm1, %v972_v32, 0.0  ;;  %895 = vmatpush1.bf16.msra.mxu0 %v894_v10  ;;  %v472_v32 = vld [vmem:[#allocation11 + $0x18] sm:$0xff]  ;;  %v499_v10 = vld [vmem:[#allocation11 + $0xf0] sm:$0xff] }
 0x200   :  { %235 = vadd.xlane.f32.xlu0 %v1390_v24  ;;  %v896_v34 = vpack.c.bf16 %v472_v32, %v470_v30  ;;  %928 = vmatprep.subr.bf16.mxu0 %v1193_v39 }
 0x202   :  { %897 = vmatprep.subr.bf16.mxu1 %v896_v34 }
 0x28b   :  { %v711_v11 = vpop.xlane.xlu1 %710 }
 0x28c   :  { %973 = vrcp.f32 %v711_v11 }
 0x28d   :  { %975 = vlog2.f32 %v711_v11  ;;  %v236_v12 = vpop.xlane.xlu0 %235  ;;  %v926_v11 = vpack.c.bf16 %v499_v10, %v497_v9 }
 0x28e   :  { %977 = vrcp.f32 %v236_v12  ;;  %v1403_v12 = vsub.s32 1, %v1352_v15 }
 0x296   :  { %v974_v13 = vpop.eup %973 }
 0x297   :  { %v976_v14 = vpop.eup %975  ;;  %v1395_v26 = vmul.f32 %v974_v13, %v1385_v31  ;;  %v476_v31 = vld [vmem:[#allocation11 + $0x38] sm:$0xff]  ;;  %v315_v13 = vsub.s32 2, %v1352_v15 }
 0x298   :  { %v978_v19 = vpop.eup %977  ;;  %v715_v20 = vmul.f32 0.6931472, %v976_v14  ;;  %v900_v36 = vpack.c.bf16 %v476_v31, %v474_v25  ;;  %v303_v14 = vld [vmem:[%s1451_s6] sm:$0xf] }
 0x299   :  { %v238_v21 = vmul.f32 %v978_v19, %v1390_v24  ;;  %v471_v24 = vld [vmem:[#allocation11 + $0x10] sm:$0xff]  ;;  %v319_v19 = vsub.s32 3, %v1352_v15 }
 0x29a   :  { %v716_v27 = vsub.f32 %v1379_v23, %v715_v20  ;;  %v898_v35 = vpack.c.bf16 %v471_v24, %v469_v33  ;;  %v473_v23 = vld [vmem:[#allocation11 + $0x20] sm:$0xff]  ;;  %v149_v20 = vrot.slane %v1360_v17, %v1403_v12 }
 0x29b   :  { %390 = vmatmul.mubr.f32.vlgmr.msra.gmra.mrb[0].mxu1 %v238_v21  ;;  %461 = vmatmul.mubr.f32.vlgmr.msra.gmra.mrb[2].mxu0 %v238_v21  ;;  %v902_v40 = vpack.c.bf16 %v475_v37, %v473_v23  ;;  %v308_v21 = vrot.slane %v303_v14, %v1355_v16  ;;  %v618_v23 = vld [vmem:[#allocation13] sm:$0xff]  ;;  %v619_v37 = vld [vmem:[#allocation13 + $0x8] sm:$0xff] }
 0x29c   :  { %v717_v28 = vmul.f32 %v716_v27, %v1395_v26  ;;  %577 = vmatprep.mubr.f32.mxu1 %v1192_v0  ;;  %899 = vmatpush1.bf16.msra.mxu1 %v898_v35  ;;  %v316_v27 = vrot.slane %v303_v14, %v315_v13  ;;  %v225_v33 = vadd.f32 %v1367_v22, %v149_v20  ;;  %v621_v22 = vld [vmem:[#allocation13 + $0x18] sm:$0xff] }
 0x29d   :  { %901 = vmatprep.subr.bf16.mxu1 %v900_v36  ;;  %v929_v38 = vpack.c.bf16 %v619_v37, %v618_v23  ;;  %821 = vmatprep.mubr.msk.f32.mxu0 %vm1194_vm2, %v1192_v0 }
 0x29e   :  { %v718_v29 = vsel %vm130_vm1, %v717_v28, 0.0  ;;  %v312_v28 = vrot.slane %v303_v14, %v1403_v12 }
 0x29f   :  { %719 = vadd.xlane.f32.xlu0 %v718_v29  ;;  %v320_v29 = vrot.slane %v303_v14, %v319_v19  ;;  %930 = vmatpush3.bf16.msra.mxu0 %v929_v38 }
 0x2a0   :  { %903 = vmatpush1.bf16.msra.mxu1 %v902_v40  ;;  %931 = vmatprep.subr.bf16.mxu0 %v1193_v39  ;;  %v620_v40 = vld [vmem:[#allocation13 + $0x10] sm:$0xff] }
 0x2a1   :  { %905 = vmatprep.subr.bf16.mxu1 %v904_v41  ;;  %v932_v41 = vpack.c.bf16 %v621_v22, %v620_v40 }
 0x2a3   :  { %933 = vmatpush3.bf16.msra.mxu0 %v932_v41 }
 0x2a4   :  { %907 = vmatpush1.bf16.msra.mxu1 %v906_v46  ;;  %934 = vmatprep.subr.bf16.mxu0 %v1193_v39  ;;  %v625_v46 = vld [vmem:[#allocation13 + $0x38] sm:$0xff] }
 0x2a5   :  { %909 = vmatprep.subr.bf16.mxu1 %v908_v47  ;;  %v938_v47 = vpack.c.bf16 %v625_v46, %v624_v45 }
 0x2a7   :  { %936 = vmatpush3.bf16.msra.mxu0 %v935_v44 }
 0x2a8   :  { %911 = vmatpush1.bf16.msra.mxu1 %v910_v52  ;;  %937 = vmatprep.subr.bf16.mxu0 %v1193_v39  ;;  %v629_v52 = vld [vmem:[#allocation13 + $0x58] sm:$0xff] }
 0x2a9   :  { %913 = vmatprep.subr.bf16.mxu1 %v912_v53  ;;  %v944_v53 = vpack.c.bf16 %v629_v52, %v628_v51 }
 0x2ab   :  { %939 = vmatpush3.bf16.msra.mxu0 %v938_v47 }
 0x2ac   :  { %915 = vmatpush1.bf16.msra.mxu1 %v914_v58  ;;  %940 = vmatprep.subr.bf16.mxu0 %v1193_v39  ;;  %v633_v58 = vld [vmem:[#allocation13 + $0x78] sm:$0xff] }
 0x2ad   :  { %917 = vmatprep.subr.bf16.mxu1 %v916_v59  ;;  %v950_v59 = vpack.c.bf16 %v633_v58, %v632_v57 }
 0x2af   :  { %942 = vmatpush3.bf16.msra.mxu0 %v941_v50 }
 0x2b0   :  { %919 = vmatpush1.bf16.msra.mxu1 %v918_v1  ;;  %943 = vmatprep.subr.bf16.mxu0 %v1193_v39 }
 0x2b1   :  { %921 = vmatprep.subr.bf16.mxu1 %v920_v2  ;;  %v501_v2 = vld [vmem:[%s1453_s8] sm:$0x3]  ;;  %s1195_s8 = smov [#allocation14]  }
 0x2b2   :  { %v506_v3 = vrot.slane %v501_v2, %v1355_v16  ;;  %v510_v4 = vrot.slane %v501_v2, %v1403_v12  ;;  %s758_s15 = sshll.u32 %s1195_s8, 4  ;;  %s759_s15 = int_to_ptr.vmem [resolvable:$true] %s758_s15 }
 0x2b3   :  { %945 = vmatpush3.bf16.msra.mxu0 %v944_v53  ;;  %s1147_s17 = scalar_lea.vmem %s759_s15, 256  ;;  %p1152_p1 = scmp.lt.s32.totalorder %s759_s15, %s759_s15 }
 0x2b4   :  { %923 = vmatpush1.bf16.msra.mxu1 %v922_v5  ;;  %946 = vmatprep.subr.bf16.mxu0 %v1193_v39  ;;  %p1148_p0 = scmp.ne.s32.totalorder %s759_s15, %s1147_s17  ;;  %p1153_p2 = scmp.lt.s32.totalorder %s1147_s17, %s1147_s17 }
 0x2b5   :  { %925 = vmatprep.subr.bf16.mxu1 %v924_v8 }
 0x2b6   :  { %p1154_p3 = por %p1153_p2, %p1152_p1 }
 0x2b7   :  { %948 = vmatpush3.bf16.msra.mxu0 %v947_v56 }
 0x2b8   :  { %927 = vmatpush1.bf16.msra.mxu1 %v926_v11  ;;  %949 = vmatprep.subr.bf16.mxu0 %v1193_v39  ;;  %v127_v39 = vld [vmem:[#allocation7] sm:$0xff]  ;;  %p1155_p4 = pnand %p1154_p3, %p1148_p0 }
 0x2bb   :  { %951 = vmatpush3.bf16.msra.mxu0 %v950_v59 }
 0x32c   :  { %v720_v55 = vpop.xlane.xlu0 %719 }
 0x32d   :  { %v721_v56 = vadd.f32 2.0794415, %v720_v55 }
 0x36e   :  { %v391_v30 = vpop.f32.mrb[0].mxu1  ;;  %v462_v32 = vpop.f32.mrb[2].mxu0 }
 0x36f   :  { %v392_v34 = vadd.f32 %v391_v30, %v308_v21  ;;  %v1415_v24 = vadd.f32 %v462_v32, %v316_v27  ;;  %v393_v25 = vpop.f32.mrb[1].mxu1  ;;  %v464_v31 = vpop.f32.mrb[3].mxu0 }
 0x370   :  { %v394_v35 = vadd.f32 %v393_v25, %v312_v28  ;;  %v1417_v15 = vadd.f32 %v464_v31, %v320_v29 }
 0x371   :  { %v467_v36 = vadd.f32 %v392_v34, %v225_v33  ;;  %v601_v60 = vand.u32 2147483647, %v1415_v24  ;;  %v600_v28 = vmax.f32 %v1415_v24, 0.0 }
 0x373   :  { %v468_v17 = vmax.f32 %v467_v36, 0.0  ;;  %v602_v61 = vsub.f32 0.0, %v601_v60 }
 0x375   :  { %578 = vmatmul.mubr.f32.vlgmr.msra.gmra.mrb[2].mxu1 %v468_v17  ;;  %v603_v62 = vmul.f32 1.442695, %v602_v61  ;;  %v745_v61 = vsel %vm744_vm7, %v721_v56, 0.0 }
 0x377   :  { %979 = vpow2.f32 %v603_v62 }
 0x381   :  { %v980_v63 = vpop.eup %979 }
 0x382   :  { %v605_v1 = vadd.f32 1.0, %v980_v63  ;;  %v608_v10 = vmul.f32 -0.5, %v980_v63  ;;  %v611_v20 = vand.u32 2147483647, %v980_v63 }
 0x384   :  { %981 = vlog2.f32 %v605_v1  ;;  %v609_v19 = vadd.f32 1.0, %v608_v10  ;;  %vm612_vm3 = vcmp.lt.f32.partialorder %v611_v20, 0.0004427343 }
 0x386   :  { %v610_v27 = vmul.f32 %v980_v63, %v609_v19 }
 0x38e   :  { %v982_v13 = vpop.eup %981 }
 0x38f   :  { %v607_v21 = vmul.f32 0.6931472, %v982_v13 }
 0x391   :  { %v613_v16 = vsel %vm612_vm3, %v610_v27, %v607_v21 }
 0x392   :  { %v614_v12 = vadd.f32 %v613_v16, %v600_v28 }
 0x394   :  { %v615_v32 = vmax.f32 %v614_v12, 1e-12 }
 0x396   :  { %v722_v33 = vmul.f32 %v615_v32, %v615_v32 }
 0x448   :  { %v579_v5 = vpop.f32.mrb[2].mxu1 }
 0x449   :  { %v580_v6 = vadd.f32 %v579_v5, %v506_v3  ;;  %v581_v0 = vpop.f32.mrb[3].mxu1 }
 0x44a   :  { %v582_v7 = vadd.f32 %v581_v0, %v510_v4 }
 0x44b   :  { %v731_v8 = vsub.f32 %v580_v6, %v394_v35 }
 0x44c   :  { %v585_v9 = vand.u32 2147483647, %v582_v7  ;;  %v584_v23 = vmax.f32 %v582_v7, 0.0 }
 0x44d   :  { %v732_v22 = vmul.f32 %v731_v8, %v731_v8 }
 0x44e   :  { %v586_v11 = vsub.f32 0.0, %v585_v9 }
 0x450   :  { %v587_v14 = vmul.f32 1.442695, %v586_v11 }
 0x452   :  { %983 = vpow2.f32 %v587_v14 }
 0x45c   :  { %v984_v29 = vpop.eup %983 }
 0x45d   :  { %v589_v30 = vadd.f32 1.0, %v984_v29  ;;  %v592_v34 = vmul.f32 -0.5, %v984_v29  ;;  %v595_v31 = vand.u32 2147483647, %v984_v29 }
 0x45f   :  { %985 = vlog2.f32 %v589_v30  ;;  %v593_v25 = vadd.f32 1.0, %v592_v34  ;;  %vm596_vm4 = vcmp.lt.f32.partialorder %v595_v31, 0.0004427343 }
 0x460   :  { %987 = vrcp.f32 %v722_v33 }
 0x461   :  { %v594_v17 = vmul.f32 %v984_v29, %v593_v25  ;;  %989 = vlog2.f32 %v615_v32 }
 0x469   :  { %v986_v35 = vpop.eup %985 }
 0x46a   :  { %v591_v36 = vmul.f32 0.6931472, %v986_v35  ;;  %v988_v40 = vpop.eup %987 }
 0x46b   :  { %v724_v44 = vmul.f32 0.5, %v988_v40  ;;  %v990_v47 = vpop.eup %989 }
 0x46c   :  { %v597_v37 = vsel %vm596_vm4, %v594_v17, %v591_v36  ;;  %v726_v49 = vmul.f32 0.6931472, %v990_v47 }
 0x46d   :  { %v598_v38 = vadd.f32 %v597_v37, %v584_v23 }
 0x46f   :  { %v599_v24 = vmax.f32 %v598_v38, 1e-12 }
 0x471   :  { %991 = vlog2.f32 %v599_v24  ;;  %v616_v41 = vmul.f32 %v599_v24, %v127_v39  ;;  %v730_v42 = vmul.f32 %v599_v24, %v599_v24 }
 0x473   :  { %v617_v43 = vadd.f32 %v616_v41, %v580_v6  ;;  %v733_v45 = vadd.f32 %v732_v22, %v730_v42 }
 0x475   :  { %822 = vmatmul.mubr.f32.vlgmr.msra.gmra.mrb[4].mxu0 %v617_v43  ;;  %v734_v46 = vmul.f32 %v733_v45, %v724_v44 }
 0x47b   :  { %v992_v48 = vpop.eup %991 }
 0x47c   :  { %v728_v50 = vmul.f32 0.6931472, %v992_v48 }
 0x47e   :  { %v729_v51 = vsub.f32 %v726_v49, %v728_v50 }
 0x480   :  { %v735_v52 = vadd.f32 %v734_v46, %v729_v51 }
 0x482   :  { %v771_v53 = vadd.f32 -0.5, %v735_v52 }
 0x484   :  { %v737_v54 = vsel %vm131_vm5, %v771_v53, 0.0 }
 0x485   :  { %738 = vadd.xlane.f32.xlu1 %v737_v54 }
 0x512   :  { %v739_v57 = vpop.xlane.xlu1 %738 }
 0x513   :  { %v740_v58 = vadd.f32 %v739_v57, %v721_v56  ;;  %v748_v63 = vsel %vm747_vm8, %v739_v57, 0.0 }
 0x515   :  { %v742_v59 = vsel %vm741_vm6, %v740_v58, 0.0 }
 0x516   :  { %v743_v60 = vadd.f32 %v742_v59, %v1395_v26 }
 0x518   :  { %v746_v62 = vadd.f32 %v745_v61, %v743_v60 }
 0x51a   :  { %v749_v1 = vadd.f32 %v748_v63, %v746_v62 }
 0x51c   :  { %751 = vst [vmem:[#allocation14 + $0x8] sm:$0xff] %v749_v1 }
 0x548   :  { %v700_v2 = vpop.f32.mrb[4].mxu0 }
 0x549   :  { %v701_v3 = vadd.f32 %v700_v2, %v1417_v15  ;;  %v823_v4 = vpop.f32.mrb[5].mxu0 }
 0x54b   :  { %750 = vst [vmem:[#allocation14] sm:$0xff] %v701_v3 }
 0x54c   :  { %1158 = shalt.err (!%p1155_p4)
}
 0x54d   :  { %s1159_s21 = scalar_lea.hbm %s1455_s10, 256 }
 0x54e   :  { %p1160_p5 = scmp.ne.s32.totalorder %s1455_s10, %s1159_s21  ;;  %p1163_p6 = scmp.lt.u32.totalorder %s1159_s21, %s1455_s10 }
 0x550   :  { %p1165_p7 = pnand %p1163_p6, %p1160_p5 }
 0x552   :  { %1168 = shalt.err (!%p1165_p7)
}
 0x553   :  { %761 = dma.vmem_to_hbm [thread:$0]  %s759_s15, 256, %s1455_s10, [#allocation4]  }
 0x554   :  { %1177 = dma.done.wait [#allocation4], 256  }
 0x555   :  { %1178 = vsyncadd [#allocation4], 4294967040 }
 0x556   :  { %765 = vsyncpa [#allocation3], 1 }
 0x557   :  { %766 = vsyncpa [#allocation6], 1 }
 0x558   :  { %767 = vsyncpa [#allocation9], 1 }
 0x559   :  { %768 = vsyncpa [#allocation12], 1 }
 0x55a   :  { %769 = vsyncpa [#allocation4], 1 }

</bundles_post_ra>
